<compile_context>
chip_gen: v7x
topology: tpu7x:2x2x1
jax: 0.10.0
libtpu: 0.0.40
codegen_flags: <defaults>
</compile_context>

<pallas_src>
import math
import numpy as np
import jax
import jax.numpy as jnp
from jax.experimental import pallas as pl
from jax.experimental.pallas import tpu as pltpu


def _round_up(x, m):
    return ((x + m - 1) // m) * m


def _i32(v):
    """Python int -> int32 constant with two's-complement wraparound."""
    v &= 0xFFFFFFFF
    if v >= 0x80000000:
        v -= 1 << 32
    return jnp.int32(v)


def _lsr(x, s):
    """Logical right shift for int32 (jnp >> is arithmetic on signed ints)."""
    return (x >> s) & ((1 << (32 - s)) - 1)


def _dropout_keep_mask(seed, layer, row0, shape):
    """Bernoulli(0.5) keep mask from a counter-based int32 hash (lowbias32-style mixer).

    Pure int32 jnp ops -> lowers on Mosaic and in interpret mode.  The mask is a function of
    (seed, layer, global row, global col) only, so it is independent of tiling / fusion.
    """
    r = jax.lax.broadcasted_iota(jnp.int32, shape, 0) + row0
    c = jax.lax.broadcasted_iota(jnp.int32, shape, 1)
    x = r * _i32(0x9E3779B1) + c * _i32(0x85EBCA77)
    x = x ^ (seed + layer * _i32(0x27D4EB2F))
    x = x ^ _lsr(x, 16)
    x = x * _i32(0x7FEB352D)
    x = x ^ _lsr(x, 15)
    x = x * _i32(0x846CA68B)
    x = x ^ _lsr(x, 16)
    return x >= 0                       # well-mixed sign bit -> P(keep) = 0.5


def _make_prenet_kernel(num_layers, tile_rows):
    def kernel(seed_ref, x_ref, *rest):
        # seed_ref: SMEM (1,) int32 (scalar prefetch); rest = (w_0..w_{L-1}, o_ref)
        w_refs, o_ref = rest[:num_layers], rest[num_layers]
        seed = seed_ref[0]
        row0 = pl.program_id(0) * tile_rows          # global row offset of this tile
        h = x_ref[...]
        for l in range(num_layers):
            y = jnp.dot(h, w_refs[l][...], preferred_element_type=jnp.float32)
            y = jnp.maximum(y, 0.0)                                  # ReLU
            keep = _dropout_keep_mask(seed, l, row0, y.shape)
            h = jnp.where(keep, y * 2.0, 0.0)        # inverted dropout, p=0.5, always on
        o_ref[...] = h.astype(o_ref.dtype)           # only the final layer hits HBM
    return kernel


def _choose_tile_m(m, tile_m):
    """Row-tile size: multiple of 8, capped at tile_m, and (for m > 8) small enough that the
    grid has >= 2 tiles so v7x megacore can shard the 'parallel' axis over both TCs."""
    if m <= 8:
        return m
    return min(tile_m, _round_up((m + 1) // 2, 8))


def prepare_prenet_params(weights, dtype=jnp.float32):
    """Hoisted out of the forward path: torch-layout (out,in) -> (in,out) transpose + cast,
    and zero-pad the FINAL layer's out-dim to a multiple of 128 so the fused kernel's only
    HBM store is lane-dense (sub-128-wide stores lower to masked vst.msk)."""
    out_dim = int(weights[-1].shape[0])
    last = len(weights) - 1
    prepped = []
    for idx, w in enumerate(weights):
        wt = jnp.asarray(w, dtype=dtype).T
        if idx == last:
            n_pad = _round_up(wt.shape[1], 128)
            if n_pad != wt.shape[1]:
                wt = jnp.pad(wt, ((0, 0), (0, n_pad - wt.shape[1])))
        prepped.append(wt)
    return prepped, out_dim


def prenet_forward(x, prepared_weights, out_dim, *, seed=0, tile_m=512):
    """Fused Prenet forward: Linear(bias=False) -> ReLU -> Dropout(0.5, always on) per layer,
    all layers in a single pallas_call.  x: (..., in_dim); prepared_weights from
    prepare_prenet_params (each (in_l, out_l), final one lane-padded to a multiple of 128)."""
    lead = x.shape[:-1]
    in_dim = x.shape[-1]
    x2d = x.reshape(-1, in_dim)
    m = x2d.shape[0]
    num_layers = len(prepared_weights)
    n_pad = prepared_weights[-1].shape[1]

    tm = _choose_tile_m(m, tile_m)
    grid = (pl.cdiv(m, tm),)        # ragged last tile handled by Pallas masking (no jnp.pad)

    in_specs = [pl.BlockSpec((tm, in_dim), lambda i, s: (i, 0))]       # x row tile
    for w in prepared_weights:                                         # weights: resident
        in_specs.append(pl.BlockSpec(w.shape, lambda i, s: (0, 0)))

    out = pl.pallas_call(
        _make_prenet_kernel(num_layers, tm),
        out_shape=jax.ShapeDtypeStruct((m, n_pad), x.dtype),
        grid_spec=pltpu.PrefetchScalarGridSpec(
            num_scalar_prefetch=1,
            grid=grid,
            in_specs=in_specs,
            out_specs=pl.BlockSpec((tm, n_pad), lambda i, s: (i, 0)),
        ),
        compiler_params=pltpu.CompilerParams(
            dimension_semantics=("parallel",),      # row tiles are independent
        ),
    )(jnp.asarray([seed], dtype=jnp.int32), x2d, *prepared_weights)

    if n_pad != out_dim:
        out = out[:, :out_dim]
    return out.reshape(*lead, out_dim)


def prenet_reference(x, weights, *, seed=0):
    """Pure-JAX replay of the kernel semantics (same hash-based dropout mask)."""
    lead = x.shape[:-1]
    h = x.reshape(-1, x.shape[-1]).astype(jnp.float32)
    for l, w in enumerate(weights):
        y = jnp.matmul(h, jnp.asarray(w, jnp.float32).T,
                       precision=jax.lax.Precision.HIGHEST)
        y = jnp.maximum(y, 0.0)
        keep = _dropout_keep_mask(jnp.int32(seed), l, 0, y.shape)
        h = jnp.where(keep, y * 2.0, 0.0)
    return h.reshape(*lead, h.shape[-1]).astype(x.dtype)


if __name__ == "__main__":
    # Small shapes consistent with the module: x (B, T, in_dim), sizes = [64, 32].
    B, T, in_dim = 2, 8, 32
    sizes = [64, 32]
    seed = 1234

    key = jax.random.PRNGKey(0)
    kx, kw = jax.random.split(key, 2)
    x = jax.random.normal(kx, (B, T, in_dim), dtype=jnp.float32)

    # xavier_uniform_(gain=1.0), bias=False  (torch Linear layout: (out, in))
    in_sizes = [in_dim] + sizes[:-1]
    weights = []
    for i, (ins, outs) in enumerate(zip(in_sizes, sizes)):
        limit = math.sqrt(6.0 / (ins + outs))
        weights.append(
            jax.random.uniform(jax.random.fold_in(kw, i), (outs, ins),
                               minval=-limit, maxval=limit, dtype=jnp.float32)
        )

    prepped, out_dim = prepare_prenet_params(weights)   # hoisted out of the forward path
    out = jax.block_until_ready(prenet_forward(x, prepped, out_dim, seed=seed))
    assert out.shape == (B, T, sizes[-1]), out.shape

    # Validation: the dropout mask is a deterministic hash, so the fused kernel must match a
    # pure-JAX replay of linear -> relu -> mask*2 exactly (up to matmul rounding).
    ref = jax.block_until_ready(prenet_reference(x, weights, seed=seed))
    np.testing.assert_allclose(np.asarray(out), np.asarray(ref), rtol=1e-4, atol=1e-4)

    # Sanity: ReLU + dropout(0.5) are actually firing (output neither all-zero nor dense).
    nz = float((np.asarray(out) != 0.0).mean())
    assert 0.02 < nz < 0.9, nz

    print("KERNEL_OK")
</pallas_src>

<mosaic_0001>
module attributes {stable_mosaic.version = 11 : i64} {
  func.func @kernel(%arg0: i32, %arg1: memref<1xi32, #tpu.memory_space<smem>>, %arg2: memref<8x32xf32, #tpu.memory_space<vmem>>, %arg3: memref<32x64xf32, #tpu.memory_space<vmem>>, %arg4: memref<64x128xf32, #tpu.memory_space<vmem>>, %arg5: memref<8x128xf32, #tpu.memory_space<vmem>>) attributes {dimension_semantics = [#tpu.dimension_semantics<parallel>], iteration_bounds = array<i64: 2>, scalar_prefetch = 1 : i64, scratch_operands = 0 : i64, tpu.core_type = #tpu.core_type<tc>, window_params = [{transform_indices = @transform_0, window_bounds = array<i64: 8, 32>}, {pipeline_mode = #tpu.pipeline_mode<synchronous>, transform_indices = @transform_1, window_bounds = array<i64: 32, 64>}, {pipeline_mode = #tpu.pipeline_mode<synchronous>, transform_indices = @transform_2, window_bounds = array<i64: 64, 128>}, {transform_indices = @transform_3, window_bounds = array<i64: 8, 128>}]} {
    %c0 = arith.constant 0 : index
    %0 = memref.load %arg1[%c0] : memref<1xi32, #tpu.memory_space<smem>>
    %c8_i32 = arith.constant 8 : i32
    %1 = arith.muli %arg0, %c8_i32 : i32
    %c0_0 = arith.constant 0 : index
    %c0_1 = arith.constant 0 : index
    %2 = vector.load %arg2[%c0_0, %c0_1] : memref<8x32xf32, #tpu.memory_space<vmem>>, vector<8x32xf32>
    %c0_2 = arith.constant 0 : index
    %c0_3 = arith.constant 0 : index
    %3 = vector.load %arg3[%c0_2, %c0_3] : memref<32x64xf32, #tpu.memory_space<vmem>>, vector<32x64xf32>
    %cst = arith.constant dense<0.000000e+00> : vector<8x64xf32>
    %4 = tpu.matmul %2, %3, %cst {dimension_numbers = #tpu.dot_dimension_numbers<[1], [0], [0], [1], [0, 0, 1, 1], [], []>} : vector<8x32xf32>, vector<32x64xf32>, vector<8x64xf32> -> vector<8x64xf32>
    %cst_4 = arith.constant 0.000000e+00 : f32
    %5 = vector.broadcast %cst_4 : f32 to vector<8x64xf32>
    %6 = arith.maximumf %4, %5 : vector<8x64xf32>
    %7 = tpu.iota {dimensions = array<i32: 0>} : vector<8x64xi32>
    %8 = vector.broadcast %1 : i32 to vector<8x64xi32>
    %9 = arith.addi %7, %8 : vector<8x64xi32>
    %10 = tpu.iota {dimensions = array<i32: 1>} : vector<8x64xi32>
    %c-1640531535_i32 = arith.constant -1640531535 : i32
    %11 = vector.broadcast %c-1640531535_i32 : i32 to vector<8x64xi32>
    %12 = arith.muli %9, %11 : vector<8x64xi32>
    %c-2048144777_i32 = arith.constant -2048144777 : i32
    %13 = vector.broadcast %c-2048144777_i32 : i32 to vector<8x64xi32>
    %14 = arith.muli %10, %13 : vector<8x64xi32>
    %15 = arith.addi %12, %14 : vector<8x64xi32>
    %c0_i32 = arith.constant 0 : i32
    %c668265263_i32 = arith.constant 668265263 : i32
    %16 = arith.muli %c0_i32, %c668265263_i32 : i32
    %17 = arith.addi %0, %16 : i32
    %18 = vector.broadcast %17 : i32 to vector<8x64xi32>
    %19 = arith.xori %15, %18 : vector<8x64xi32>
    %c16_i32 = arith.constant 16 : i32
    %20 = vector.broadcast %c16_i32 : i32 to vector<8x64xi32>
    %21 = arith.shrsi %19, %20 : vector<8x64xi32>
    %c65535_i32 = arith.constant 65535 : i32
    %22 = vector.broadcast %c65535_i32 : i32 to vector<8x64xi32>
    %23 = arith.andi %21, %22 : vector<8x64xi32>
    %24 = arith.xori %19, %23 : vector<8x64xi32>
    %c2146121005_i32 = arith.constant 2146121005 : i32
    %25 = vector.broadcast %c2146121005_i32 : i32 to vector<8x64xi32>
    %26 = arith.muli %24, %25 : vector<8x64xi32>
    %c15_i32 = arith.constant 15 : i32
    %27 = vector.broadcast %c15_i32 : i32 to vector<8x64xi32>
    %28 = arith.shrsi %26, %27 : vector<8x64xi32>
    %c131071_i32 = arith.constant 131071 : i32
    %29 = vector.broadcast %c131071_i32 : i32 to vector<8x64xi32>
    %30 = arith.andi %28, %29 : vector<8x64xi32>
    %31 = arith.xori %26, %30 : vector<8x64xi32>
    %c-2073254261_i32 = arith.constant -2073254261 : i32
    %32 = vector.broadcast %c-2073254261_i32 : i32 to vector<8x64xi32>
    %33 = arith.muli %31, %32 : vector<8x64xi32>
    %c16_i32_5 = arith.constant 16 : i32
    %34 = vector.broadcast %c16_i32_5 : i32 to vector<8x64xi32>
    %35 = arith.shrsi %33, %34 : vector<8x64xi32>
    %c65535_i32_6 = arith.constant 65535 : i32
    %36 = vector.broadcast %c65535_i32_6 : i32 to vector<8x64xi32>
    %37 = arith.andi %35, %36 : vector<8x64xi32>
    %38 = arith.xori %33, %37 : vector<8x64xi32>
    %c0_i32_7 = arith.constant 0 : i32
    %39 = vector.broadcast %c0_i32_7 : i32 to vector<8x64xi32>
    %40 = arith.cmpi sge, %38, %39 : vector<8x64xi32>
    %cst_8 = arith.constant 2.000000e+00 : f32
    %41 = vector.broadcast %cst_8 : f32 to vector<8x64xf32>
    %42 = arith.mulf %6, %41 : vector<8x64xf32>
    %cst_9 = arith.constant 0.000000e+00 : f32
    %43 = vector.broadcast %cst_9 : f32 to vector<8x64xf32>
    %44 = arith.select %40, %42, %43 : vector<8x64xi1>, vector<8x64xf32>
    %c0_10 = arith.constant 0 : index
    %c0_11 = arith.constant 0 : index
    %45 = vector.load %arg4[%c0_10, %c0_11] : memref<64x128xf32, #tpu.memory_space<vmem>>, vector<64x128xf32>
    %cst_12 = arith.constant dense<0.000000e+00> : vector<8x128xf32>
    %46 = tpu.matmul %44, %45, %cst_12 {dimension_numbers = #tpu.dot_dimension_numbers<[1], [0], [0], [1], [0, 0, 1, 1], [], []>} : vector<8x64xf32>, vector<64x128xf32>, vector<8x128xf32> -> vector<8x128xf32>
    %cst_13 = arith.constant 0.000000e+00 : f32
    %47 = vector.broadcast %cst_13 : f32 to vector<8x128xf32>
    %48 = arith.maximumf %46, %47 : vector<8x128xf32>
    %49 = tpu.iota {dimensions = array<i32: 0>} : vector<8x128xi32>
    %50 = vector.broadcast %1 : i32 to vector<8x128xi32>
    %51 = arith.addi %49, %50 : vector<8x128xi32>
    %52 = tpu.iota {dimensions = array<i32: 1>} : vector<8x128xi32>
    %c-1640531535_i32_14 = arith.constant -1640531535 : i32
    %53 = vector.broadcast %c-1640531535_i32_14 : i32 to vector<8x128xi32>
    %54 = arith.muli %51, %53 : vector<8x128xi32>
    %c-2048144777_i32_15 = arith.constant -2048144777 : i32
    %55 = vector.broadcast %c-2048144777_i32_15 : i32 to vector<8x128xi32>
    %56 = arith.muli %52, %55 : vector<8x128xi32>
    %57 = arith.addi %54, %56 : vector<8x128xi32>
    %c1_i32 = arith.constant 1 : i32
    %c668265263_i32_16 = arith.constant 668265263 : i32
    %58 = arith.muli %c1_i32, %c668265263_i32_16 : i32
    %59 = arith.addi %0, %58 : i32
    %60 = vector.broadcast %59 : i32 to vector<8x128xi32>
    %61 = arith.xori %57, %60 : vector<8x128xi32>
    %c16_i32_17 = arith.constant 16 : i32
    %62 = vector.broadcast %c16_i32_17 : i32 to vector<8x128xi32>
    %63 = arith.shrsi %61, %62 : vector<8x128xi32>
    %c65535_i32_18 = arith.constant 65535 : i32
    %64 = vector.broadcast %c65535_i32_18 : i32 to vector<8x128xi32>
    %65 = arith.andi %63, %64 : vector<8x128xi32>
    %66 = arith.xori %61, %65 : vector<8x128xi32>
    %c2146121005_i32_19 = arith.constant 2146121005 : i32
    %67 = vector.broadcast %c2146121005_i32_19 : i32 to vector<8x128xi32>
    %68 = arith.muli %66, %67 : vector<8x128xi32>
    %c15_i32_20 = arith.constant 15 : i32
    %69 = vector.broadcast %c15_i32_20 : i32 to vector<8x128xi32>
    %70 = arith.shrsi %68, %69 : vector<8x128xi32>
    %c131071_i32_21 = arith.constant 131071 : i32
    %71 = vector.broadcast %c131071_i32_21 : i32 to vector<8x128xi32>
    %72 = arith.andi %70, %71 : vector<8x128xi32>
    %73 = arith.xori %68, %72 : vector<8x128xi32>
    %c-2073254261_i32_22 = arith.constant -2073254261 : i32
    %74 = vector.broadcast %c-2073254261_i32_22 : i32 to vector<8x128xi32>
    %75 = arith.muli %73, %74 : vector<8x128xi32>
    %c16_i32_23 = arith.constant 16 : i32
    %76 = vector.broadcast %c16_i32_23 : i32 to vector<8x128xi32>
    %77 = arith.shrsi %75, %76 : vector<8x128xi32>
    %c65535_i32_24 = arith.constant 65535 : i32
    %78 = vector.broadcast %c65535_i32_24 : i32 to vector<8x128xi32>
    %79 = arith.andi %77, %78 : vector<8x128xi32>
    %80 = arith.xori %75, %79 : vector<8x128xi32>
    %c0_i32_25 = arith.constant 0 : i32
    %81 = vector.broadcast %c0_i32_25 : i32 to vector<8x128xi32>
    %82 = arith.cmpi sge, %80, %81 : vector<8x128xi32>
    %cst_26 = arith.constant 2.000000e+00 : f32
    %83 = vector.broadcast %cst_26 : f32 to vector<8x128xf32>
    %84 = arith.mulf %48, %83 : vector<8x128xf32>
    %cst_27 = arith.constant 0.000000e+00 : f32
    %85 = vector.broadcast %cst_27 : f32 to vector<8x128xf32>
    %86 = arith.select %82, %84, %85 : vector<8x128xi1>, vector<8x128xf32>
    %c0_28 = arith.constant 0 : index
    %c0_29 = arith.constant 0 : index
    %87 = vector.load %arg5[%c0_28, %c0_29] : memref<8x128xf32, #tpu.memory_space<vmem>>, vector<8x128xf32>
    tpu.vector_store %arg5[%c0_28, %c0_29], %86 {strides = array<i32>} : memref<8x128xf32, #tpu.memory_space<vmem>>, vector<8x128xf32>,
    return
  }
  func.func @transform_0(%arg0: i32, %arg1: memref<1xi32, #tpu.memory_space<smem>>) -> (i32, i32) {
    %c0_i32 = arith.constant 0 : i32
    %c0_i32_0 = arith.constant 0 : i32
    return %arg0, %c0_i32 : i32, i32
  }
  func.func @transform_1(%arg0: i32, %arg1: memref<1xi32, #tpu.memory_space<smem>>) -> (i32, i32) {
    %c0_i32 = arith.constant 0 : i32
    %c0_i32_0 = arith.constant 0 : i32
    %c0_i32_1 = arith.constant 0 : i32
    return %c0_i32, %c0_i32_0 : i32, i32
  }
  func.func @transform_2(%arg0: i32, %arg1: memref<1xi32, #tpu.memory_space<smem>>) -> (i32, i32) {
    %c0_i32 = arith.constant 0 : i32
    %c0_i32_0 = arith.constant 0 : i32
    %c0_i32_1 = arith.constant 0 : i32
    return %c0_i32, %c0_i32_0 : i32, i32
  }
  func.func @transform_3(%arg0: i32, %arg1: memref<1xi32, #tpu.memory_space<smem>>) -> (i32, i32) {
    %c0_i32 = arith.constant 0 : i32
    %c0_i32_0 = arith.constant 0 : i32
    return %arg0, %c0_i32 : i32, i32
  }
}

</mosaic_0001>

<bundles_post_ra>
// kernel: tpu_custom_call.1
= control target key start
LH: loop header
LB: loop body
LE: loop exit
PB: predicated region body
PF: predicated region fallthrough
CT: control target
= control target key end

     0   :  { %s1119_s0 = inlined_call_operand.<no memory space> [shape: s32[1], index: 0, kind: input, shape index: {}]   ;;  %s1120_s1 = inlined_call_operand.hbm [shape: f32[16,32], index: 1, kind: input, shape index: {}]   ;;  %s1121_s2 = inlined_call_operand.hbm [shape: f32[32,64], index: 2, kind: input, shape index: {}]   ;;  %s1122_s3 = inlined_call_operand.hbm [shape: f32[64,128], index: 3, kind: input, shape index: {}]   ;;  %s1123_s4 = inlined_call_operand.hbm [shape: f32[16,128], index: 4, kind: output, shape index: {}]  }
   0x1   :  { %9 = sst [smem:[#allocation3]] %s1119_s0 }
   0x2   :  { %10 = vsyncpa [#allocation5], 0 }
   0x3   :  { %12 = vsyncpa [#allocation5 + $0x1], 0 }
   0x4   :  { %13 = vsyncpa [#allocation8], 0 }
   0x5   :  { %14 = vsyncpa [#allocation6], 0 }
   0x6   :  { %16 = vsyncpa [#allocation6 + $0x1], 0  ;;  %s882_s17 = smov 0   ;;  %s884_s18 = smov 0  }
   0x7   :  { %s886_s19 = smov 0   ;;  %s888_s20 = smov 0  }
   0x8 LB: > { %s903_s0 = sadd.s32 4294967295, %s843_s20   ;;  %s528_s21 = sadd.s32 4294967294, %s843_s20   ;;  %s843_s20 = sphi %s888_s20, %s1143_s20   ;;  %s839_s19 = sphi %s886_s19, %s1142_s19   ;;  %s835_s18 = sphi %s884_s18, %s1141_s18   ;;  %s831_s17 = sphi %s882_s17, %s1140_s17  }
   0x9   : > { %p42_p0 = scmp.ne.s32.totalorder %s835_s18, %s831_s17  ;;  %p1124_p1 = scmp.eq.s32.totalorder %s903_s0, 0 }
   0xa   : > { %p114_p3 = scmp.eq.s32.totalorder %s528_s21, 1  ;;  %p529_p5 = scmp.ge.s32.totalorder %s843_s20, 1 }
   0xb   : > { %p912_p4 = por %p1124_p1, %p42_p0  ;;  %p121_p7 = scmp.lt.s32.totalorder %s843_s20, 3 }
   0xc   : > { %p917_p6 = por %p114_p3, %p42_p0  ;;  %s845_s25 = smov [#allocation7]  }
   0xd   : > { %s1127_s22 = scalar_select %p912_p4, 1, 0 }
   0xe   : > { %s1128_s23 = scalar_select %p917_p6, 1, 0 }
   0xf   : > { %p922_p8 = pnand %p529_p5, %p121_p7  ;;  %s133_s26 = sshll.u32 %s845_s25, 4  ;;  %s926_s26 = int_to_ptr.vmem [resolvable:$true] %s133_s26 }
  0x10   : > { %s846_s28 = smov [#allocation9]   ;;  %s687_s6 = scalar_lea.hbm %s1121_s2, 512 }
  0x11   : > { %p627_p9 = pneg %p922_p8  ;;  %s146_s29 = sshll.u32 %s846_s28, 4  ;;  %s937_s29 = int_to_ptr.vmem [resolvable:$true] %s146_s29 }
  0x12   : > { %p688_p12 = scmp.ne.s32.totalorder %s1121_s2, %s687_s6  ;;  %p694_p5 = scmp.lt.u32.totalorder %s687_s6, %s1121_s2 }
  0x13   : > { %p933_p11 = pnand %p627_p9, %p1124_p1 }
  0x15   : > { %p689_p13 = pneg %p933_p11 }
  0x17   : > { %p690_p0 = pnand %p689_p13, %p688_p12 }
  0x19   : > { %p691_p3 = pneg %p690_p0 }
  0x1b   : > { %p696_p7 = pnand %p694_p5, %p691_p3 }
  0x1d   : > { %699 = shalt.err (!%p696_p7)
}
  0x1e   : > { %s700_s11 = scalar_lea.vmem %s926_s26, 512  ;;  %p708_p2 = scmp.lt.s32.totalorder %s926_s26, %s926_s26 }
  0x1f   : > { %p701_p9 = scmp.ne.s32.totalorder %s926_s26, %s700_s11  ;;  %p709_p12 = scmp.lt.s32.totalorder %s700_s11, %s700_s11 }
  0x21   : > { %p703_p10 = pnand %p701_p9, %p689_p13  ;;  %p710_p0 = por %p709_p12, %p708_p2 }
  0x23   : > { %p704_p1 = pneg %p703_p10 }
  0x25   : > { %p711_p6 = pnand %p710_p0, %p704_p1 }
  0x27   : > { %714 = shalt.err (!%p711_p6)
}
  0x28   : > { %s847_s12 = smov 128   ;;  %s848_s13 = smov 8  }
  0x29   : > { %630 = dma.hbm_to_vmem [thread:$0]  (!%p933_p11), %s1121_s2, 512, %s926_s26, [#allocation8], %s847_s12, %s847_s12, %s848_s13  }
  0x2a   : > { %s715_s25 = scalar_lea.hbm %s1122_s3, 1024 }
  0x2b   : > { %p716_p2 = scmp.ne.s32.totalorder %s1122_s3, %s715_s25  ;;  %p722_p10 = scmp.lt.u32.totalorder %s715_s25, %s1122_s3 }
  0x2d   : > { %p718_p1 = pnand %p716_p2, %p689_p13 }
  0x2f   : > { %p719_p6 = pneg %p718_p1 }
  0x31   : > { %p724_p3 = pnand %p722_p10, %p719_p6 }
  0x33   : > { %727 = shalt.err (!%p724_p3)
}
  0x34   : > { %s728_s26 = scalar_lea.vmem %s937_s29, 1024  ;;  %p736_p12 = scmp.lt.s32.totalorder %s937_s29, %s937_s29 }
  0x35   : > { %p729_p5 = scmp.ne.s32.totalorder %s937_s29, %s728_s26  ;;  %p737_p0 = scmp.lt.s32.totalorder %s728_s26, %s728_s26 }
  0x37   : > { %p731_p7 = pnand %p729_p5, %p689_p13  ;;  %p738_p2 = por %p737_p0, %p736_p12 }
  0x39   : > { %p732_p9 = pneg %p731_p7 }
  0x3b   : > { %p739_p1 = pnand %p738_p2, %p732_p9 }
  0x3d   : > { %742 = shalt.err (!%p739_p1)
}
  0x3e   : > { %633 = dma.hbm_to_vmem [thread:$0]  (!%p933_p11), %s1122_s3, 1024, %s937_s29, [#allocation8], %s847_s12, %s847_s12, %s848_s13  }
  0x3f   : > { %s992_s9 = sadd.s32 1, %s843_s20   ;;  %s29_s27 = sadd.s32 1, %s839_s19 }
  0x40   : > { %s26_s10 = ssub.s32 %s843_s20, %s992_s9  ;;  %p36_p13 = scmp.ne.s32.totalorder %s839_s19, %s835_s18 }
  0x41   : > { %p27_p6 = scmp.eq.s32.totalorder %s26_s10, 0  ;;  %p37_p10 = scmp.eq.s32.totalorder %s843_s20, 0 }
  0x42   : > { %p1131_p3 = scmp.eq.s32.totalorder %s903_s0, 1  ;;  %p644_p7 = scmp.lt.s32.totalorder %s843_s20, 2 }
  0x43   : > { %s1008_s14 = scalar_select %p27_p6, %s839_s19, %s29_s27  }
  0x44   : > { %p1002_p5 = por %p1131_p3, %p36_p13  ;;  %p38_p9 = por %p37_p10, %p36_p13 }
  0x45   : > { %s160_s15 = sand.u32 1, %s839_s19   ;;  %s534_s29 = sshll.u32 %s843_s20, 7 }
  0x46   : > { %s1132_s11 = scalar_select %p1002_p5, 1, 0 }
  0x47   : > { %s533_s16 = sshll.u32 %s160_s15, 3  ;;  %s1015_s21 = scalar_lea.hbm %s1120_s1, %s534_s29 }
  0x48   : > { %s164_s25 = scalar_lea.vmem [#allocation4], %s533_s16  ;;  %p1019_p11 = pnand %p644_p7, %p38_p9 }
  0x49   : > { %s171_s28 = sshll.u32 %s164_s25, 4  ;;  %s161_s5 = scalar_lea.sflag [#allocation5], %s160_s15  ;;  %s1017_s28 = int_to_ptr.vmem [resolvable:$true] %s171_s28 }
  0x4a   : > { %s743_s6 = scalar_lea.hbm %s1015_s21, 128  ;;  %p745_p0 = pneg %p1019_p11 }
  0x4b   : > { %p744_p12 = scmp.ne.s32.totalorder %s1015_s21, %s743_s6  ;;  %s748_s8 = scalar_lea.hbm %s1120_s1, 256 }
  0x4c   : > { %p749_p13 = scmp.lt.u32.totalorder %s1015_s21, %s1120_s1  ;;  %p750_p6 = scmp.lt.u32.totalorder %s748_s8, %s743_s6 }
  0x4d   : > { %p746_p2 = pnand %p745_p0, %p744_p12  ;;  %p752_p3 = scmp.lt.u32.totalorder %s743_s6, %s1015_s21 }
  0x4e   : > { %p751_p10 = por %p750_p6, %p749_p13 }
  0x4f   : > { %p747_p1 = pneg %p746_p2 }
  0x50   : > { %p753_p7 = por %p752_p3, %p751_p10 }
  0x52   : > { %p754_p9 = pnand %p753_p7, %p747_p1 }
  0x54   : > { %757 = shalt.err (!%p754_p9)
}
  0x55   : > { %s758_s15 = scalar_lea.vmem %s1017_s28, 128  ;;  %s849_s16 = smov [#allocation4]  }
  0x56   : > { %p759_p12 = scmp.ne.s32.totalorder %s1017_s28, %s758_s15  ;;  %s763_s29 = sshll.u32 %s849_s16, 4  ;;  %s764_s29 = int_to_ptr.vmem [resolvable:$false] %s763_s29 }
  0x57   : > { %s765_s12 = scalar_lea.vmem %s764_s29, 256  ;;  %p766_p4 = scmp.lt.s32.totalorder %s1017_s28, %s764_s29 }
  0x58   : > { %p761_p2 = pnand %p759_p12, %p745_p0  ;;  %p767_p13 = scmp.lt.s32.totalorder %s765_s12, %s758_s15 }
  0x5a   : > { %p762_p5 = pneg %p761_p2  ;;  %p768_p6 = por %p767_p13, %p766_p4 }
  0x5c   : > { %p769_p10 = pnand %p768_p6, %p762_p5 }
  0x5e   : > { %772 = shalt.err (!%p769_p10)
}
  0x5f   : > { %637 = dma.hbm_to_vmem [thread:$0]  (!%p1019_p11), %s1015_s21, 128, %s1017_s28, %s161_s5  }
  0x60   : > { %180 = sbr.rel (%p922_p8) target bundleno = 565 (0x235), region = 32  ;;  %s1051_s13 = sand.u32 (!%p922_p8), 1, %s835_s18  }
  0x61   : > { %s536_s25 = sshll.u32 (!%p922_p8), %s1051_s13, 3  ;;  %s183_s6 = scalar_lea.sflag (!%p922_p8), [#allocation5], %s1051_s13 }
  0x62   : > { %s1057_s26 = scalar_lea.vmem (!%p922_p8), [#allocation4], %s536_s25  ;;  %p1134_p4 = scmp.ne.s32.totalorder (!%p922_p8), %s1127_s22, 0 }
  0x67   : > { %818 = dma.done.wait (%p1134_p4), %s183_s6, 128  }
  0x68   : > { %820 = vsyncadd (%p1134_p4), %s183_s6, 4294967168  ;;  %p1135_p5 = scmp.eq.s32.totalorder %s903_s0, 0 }
  0x6a   : > { %822 = dma.done.wait (%p1135_p5), [#allocation8], 1536   ;;  %p1136_p8 = pmov %p1135_p5 }
  0x6b   : > { %v850_v0 = vmov 0.0|0.0   ;;  %vm851_vm0 = vmmov 0   ;;  %v852_v1 = vmov 0.0   ;;  %v220_v2 = vld [vmem:[#allocation7] sm:$0xff]  ;;  %v221_v3 = vld [vmem:[#allocation7 + $0x8] sm:$0xff]  ;;  %v222_v4 = vld [vmem:[#allocation7 + $0x10] sm:$0xff]  ;;  %v299_v21 = vlaneseq }
  0x6c   : > { %824 = vsyncadd (%p1136_p8), [#allocation8], 4294965760  ;;  %597 = vmatprep.subr.bf16.mxu0 %v850_v0  ;;  %575 = vmatprep.mubr.msk.f32.mxu0 %vm851_vm0, %v852_v1  ;;  %v598_v5 = vpack.c.bf16 %v221_v3, %v220_v2  ;;  %v223_v6 = vld [vmem:[#allocation7 + $0x18] sm:$0xff]  ;;  %v324_v7 = vld [vmem:[#allocation9] sm:$0xff]  ;;  %vm224_vm1 = vcmask 261120   ;;  %s540_s22 = sshll.u32 %s903_s0, 3 }
  0x6d   : > { %603 = vmatprep.subr.bf16.mxu1 %v850_v0  ;;  %594 = vmatprep.mubr.msk.f32.mxu1 %vm851_vm0, %v852_v1  ;;  %v325_v8 = vld [vmem:[#allocation9 + $0x8] sm:$0xff]  ;;  %v326_v9 = vld [vmem:[#allocation9 + $0x10] sm:$0xff]  ;;  %v327_v10 = vld [vmem:[#allocation9 + $0x18] sm:$0xff]  ;;  %v601_v11 = vpack.c.bf16 %v223_v6, %v222_v4  ;;  %v300_v22 = vshrl.u32 %v299_v21, 7  ;;  %v301_v23 = vstv %s540_s22  ;;  %v304_v25 = vand.u32 127, %v299_v21  ;;  %s217_s24 = sld [smem:[#allocation3]] }
  0x6e   : > { %599 = vmatpush3.bf16.msra.mxu0 %v598_v5  ;;  %v604_v12 = vpack.c.bf16 %v325_v8, %v324_v7  ;;  %v607_v13 = vpack.c.bf16 %v327_v10, %v326_v9  ;;  %v328_v14 = vld [vmem:[#allocation9 + $0x20] sm:$0xff]  ;;  %v329_v15 = vld [vmem:[#allocation9 + $0x28] sm:$0xff]  ;;  %v219_v16 = vld [vmem:[%s1057_s26] sm:$0xff]  ;;  %vm332_vm3 = vcmask 523264   ;;  %s550_s28 = sshll.u32 %s903_s0, 7  ;;  %s216_s30 = scalar_lea.vmem [#allocation10], %s536_s25 }
  0x6f   : > { %600 = vmatprep.subr.bf16.mxu0 %v850_v0  ;;  %v610_v17 = vpack.c.bf16 %v329_v15, %v328_v14  ;;  %v330_v18 = vld [vmem:[#allocation9 + $0x30] sm:$0xff]  ;;  %v331_v19 = vld [vmem:[#allocation9 + $0x38] sm:$0xff]  ;;  %v302_v24 = vadd.s32 %v301_v23, %v300_v22  ;;  %v306_v27 = vmul.u32 2246822519, %v304_v25  ;;  %s439_s5 = sshll.u32 %s216_s30, 4  ;;  %s1075_s27 = scalar_lea.hbm %s1123_s4, %s550_s28  ;;  %s1077_s5 = int_to_ptr.vmem [resolvable:$true] %s439_s5 }
  0x70   : > { %605 = vmatpush3.bf16.msra.mxu1 %v604_v12  ;;  %v613_v20 = vpack.c.bf16 %v331_v19, %v330_v18  ;;  %s426_s10 = scalar_lea.sflag [#allocation6], %s1051_s13  ;;  %s773_s15 = scalar_lea.vmem %s1077_s5, 128 }
  0x71   : > { %606 = vmatprep.subr.bf16.mxu1 %v850_v0  ;;  %v305_v26 = vmul.u32 2654435761, %v302_v24  ;;  %p774_p11 = scmp.ne.s32.totalorder %s1077_s5, %s773_s15  ;;  %p1137_p0 = scmp.ne.s32.totalorder %s1132_s11, 0 }
  0x72   : > { %602 = vmatpush3.bf16.msra.mxu0 %v601_v11  ;;  %s853_s0 = smov [#allocation10]  }
  0x73   : > { %v307_v28 = vadd.s32 %v306_v27, %v305_v26  ;;  %v308_v29 = vstv %s217_s24  ;;  %s407_s21 = sadd.s32 668265263, %s217_s24  ;;  %p775_p1 = pnand %p774_p11, %p1137_p0 }
  0x74   : > { %608 = vmatpush3.bf16.msra.mxu1 %v607_v13  ;;  %v408_v44 = vstv %s407_s21  ;;  %s777_s16 = sshll.u32 %s853_s0, 4  ;;  %s778_s16 = int_to_ptr.vmem [resolvable:$false] %s777_s16 }
  0x75   : > { %576 = vmatmul.mubr.msk.f32.vlgmr.msra.gmra.mrb[0].mxu0 %vm224_vm1, %v219_v16  ;;  %609 = vmatprep.subr.bf16.mxu1 %v850_v0  ;;  %v309_v30 = vxor.u32 %v308_v29, %v307_v28  ;;  %v409_v45 = vxor.u32 %v408_v44, %v307_v28  ;;  %p776_p3 = pneg %p775_p1  ;;  %s779_s29 = scalar_lea.vmem %s778_s16, 256 }
  0x76   : > { %p780_p7 = scmp.lt.s32.totalorder %s1077_s5, %s778_s16  ;;  %p781_p9 = scmp.lt.s32.totalorder %s779_s29, %s773_s15 }
  0x77   : > { %v542_v31 = vshrl.u32 %v309_v30, 16  ;;  %v546_v46 = vshrl.u32 %v409_v45, 16 }
  0x78   : > { %611 = vmatpush3.bf16.msra.mxu1 %v610_v17  ;;  %p782_p12 = por %p781_p9, %p780_p7 }
  0x79   : > { %612 = vmatprep.subr.bf16.mxu1 %v850_v0  ;;  %v312_v32 = vxor.u32 %v542_v31, %v309_v30  ;;  %v412_v47 = vxor.u32 %v546_v46, %v409_v45 }
  0x7a   : > { %p783_p2 = pnand %p782_p12, %p776_p3 }
  0x7b   : > { %v313_v33 = vmul.u32 2146121005, %v312_v32  ;;  %v413_v48 = vmul.u32 2146121005, %v412_v47 }
  0x7c   : > { %614 = vmatpush3.bf16.msra.mxu1 %v613_v20 }
  0x7d   : > { %v543_v34 = vshrl.u32 %v313_v33, 15  ;;  %v547_v49 = vshrl.u32 %v413_v48, 15 }
  0x7f   : > { %v316_v35 = vxor.u32 %v543_v34, %v313_v33  ;;  %v416_v50 = vxor.u32 %v547_v49, %v413_v48 }
  0x81   : > { %v317_v36 = vmul.u32 2221713035, %v316_v35  ;;  %v417_v51 = vmul.u32 2221713035, %v416_v50 }
  0x83   : > { %v544_v37 = vshrl.u32 %v317_v36, 16  ;;  %v548_v52 = vshrl.u32 %v417_v51, 16 }
  0x85   : > { %v320_v38 = vxor.u32 %v544_v37, %v317_v36  ;;  %v420_v53 = vxor.u32 %v548_v52, %v417_v51 }
  0x87   : > { %vm321_vm2 = vcmp.ge.s32.totalorder %v320_v38, 0  ;;  %vm421_vm4 = vcmp.ge.s32.totalorder %v420_v53, 0 }
 0x148   : > { %v294_v39 = vpop.f32.mrb[0].mxu0 }
 0x149   : > { %v298_v40 = vmax.f32 %v294_v39, 0.0  ;;  %v577_v41 = vpop.f32.mrb[1].mxu0 }
 0x14b   : > { %v322_v42 = vmul.f32 2.0, %v298_v40 }
 0x14d   : > { %v323_v43 = vsel %vm321_vm2, %v322_v42, 0.0 }
 0x14e   : > { %595 = vmatmul.mubr.msk.f32.vlgmr.msra.gmra.mrb[0].mxu1 %vm332_vm3, %v323_v43 }
 0x221   : > { %v402_v54 = vpop.f32.mrb[0].mxu1 }
 0x222   : > { %v406_v55 = vmax.f32 %v402_v54, 0.0  ;;  %v596_v56 = vpop.f32.mrb[1].mxu1 }
 0x224   : > { %v422_v57 = vmul.f32 2.0, %v406_v55 }
 0x226   : > { %v423_v58 = vsel %vm421_vm4, %v422_v57, 0.0 }
 0x227   : > { %424 = vst [vmem:[%s216_s30] sm:$0xff] %v423_v58 }
 0x228   : > { %786 = shalt.err (!%p783_p2)
}
 0x229   : > { %s787_s12 = scalar_lea.hbm %s1075_s27, 128  ;;  %s791_s6 = scalar_lea.hbm %s1123_s4, 256 }
 0x22a   : > { %p788_p13 = scmp.ne.s32.totalorder %s1075_s27, %s787_s12  ;;  %p792_p4 = scmp.lt.u32.totalorder %s1075_s27, %s1123_s4 }
 0x22b   : > { %p793_p5 = scmp.lt.u32.totalorder %s791_s6, %s787_s12  ;;  %p795_p11 = scmp.lt.u32.totalorder %s787_s12, %s1075_s27 }
 0x22c   : > { %p789_p6 = pnand %p788_p13, %p1137_p0 }
 0x22d   : > { %p794_p8 = por %p793_p5, %p792_p4 }
 0x22e   : > { %p790_p10 = pneg %p789_p6 }
 0x22f   : > { %p796_p1 = por %p795_p11, %p794_p8 }
 0x231   : > { %p797_p3 = pnand %p796_p1, %p790_p10 }
 0x233   : > { %800 = shalt.err (!%p797_p3)
}
 0x234   : > { %625 = dma.vmem_to_hbm [thread:$0]  (%p1137_p0), %s1077_s5, 128, %s1075_s27, %s426_s10  }
 0x235 PF: > { %s451_s24 = sand.u32 1, %s831_s17   ;;  %p1138_p7 = scmp.ne.s32.totalorder %s1128_s23, 0 }
 0x236   : > { %p1139_p9 = scmp.ge.s32.totalorder %s843_s20, 2  ;;  %s452_s21 = scalar_lea.sflag [#allocation6], %s451_s24 }
 0x238   : > { %p639_p12 = pnand %p1139_p9, %p1138_p7 }
 0x23a   : > { %826 = dma.done.wait (!%p639_p12), %s452_s21, 128  }
 0x23b   : > { %828 = vsyncadd (!%p639_p12), %s452_s21, 4294967168  ;;  %p19_p2 = scmp.ge.s32.totalorder %s992_s9, 4   ;;  %s1140_s17 = smov %s835_s18 }
 0x23c   : > { %s1141_s18 = smov %s839_s19  ;;  %s1142_s19 = smov %s1008_s14 }
 0x23d   : > { %s1143_s20 = smov %s992_s9  ;;  %21 = sbr.rel (!%p19_p2) target bundleno = 8 (0x8), region = 85 }
 0x244   :  { %457 = vsyncpa [#allocation5], 1 }
 0x245   :  { %459 = vsyncpa [#allocation5 + $0x1], 1 }
 0x246   :  { %460 = vsyncpa [#allocation8], 1 }
 0x247   :  { %461 = vsyncpa [#allocation6], 1 }
 0x248   :  { %463 = vsyncpa [#allocation6 + $0x1], 1 }

</bundles_post_ra>
